<compile_context>
chip_gen: v7x
topology: tpu7x:2x2x1
jax: 0.10.0
libtpu: 0.0.40
codegen_flags: <defaults>
</compile_context>

<pallas_src>
import functools

import jax
import jax.numpy as jnp
import numpy as np
from jax.experimental import pallas as pl
from jax.experimental.pallas import tpu as pltpu


def _physical_vmem_bytes():
    """Best-effort query of per-core VMEM; conservative (v7x) fallback."""
    try:
        info = pltpu.get_tpu_info()
        cap = getattr(info, "vmem_capacity_bytes", None)
        if cap:
            return int(cap)
    except Exception:
        pass
    return 64 * 1024 * 1024


def _tile_loss(logits_ref, label_ref, *, lb_pos, lb_neg, coeff, ignore_index,
               hw, tile, tail_mask):
    """Per-tile masked loss, (1, tile) float32."""
    x_nat = logits_ref[0]                               # (C, T) native dtype
    lbl = label_ref[0]                                  # (1, T) int32
    c, t = x_nat.shape

    # Class-max in native dtype (exact for bf16), single upcast afterwards.
    m = jnp.max(x_nat, axis=0, keepdims=True)           # (1, T)
    z = x_nat.astype(jnp.float32) - m.astype(jnp.float32)   # (C, T) f32
    lse = jnp.log(jnp.sum(jnp.exp(z), axis=0, keepdims=True))  # (1, T)

    ignore = lbl == ignore_index                        # (1, T) bool
    lbl_c = jnp.where(ignore, 0, lbl)                   # clamp ignored labels
    class_ids = jax.lax.broadcasted_iota(jnp.int32, (c, t), 0)
    w = jnp.where(class_ids == lbl_c, jnp.float32(lb_pos), jnp.float32(lb_neg))
    wsum = jnp.sum(w * z, axis=0, keepdims=True)        # (1, T)

    # loss = -sum_c w_c * (z_c - lse) = coeff*lse - sum_c w_c*z_c
    loss = jnp.float32(coeff) * lse - wsum

    valid = jnp.logical_not(ignore)
    if tail_mask:  # only for the ragged last spatial tile (static decision)
        pos = pl.program_id(1) * tile + jax.lax.broadcasted_iota(jnp.int32, (1, t), 1)
        valid = jnp.logical_and(valid, pos < hw)
    return jnp.where(valid, loss, 0.0)


def _lsr_reduce_kernel(logits_ref, label_ref, lsum_ref, **kw):
    loss = _tile_loss(logits_ref, label_ref, **kw)
    lsum_ref[0] = jnp.sum(loss, axis=-1, keepdims=True)      # (1, 1)


def _lsr_none_kernel(logits_ref, label_ref, loss_ref, **kw):
    loss_ref[0] = _tile_loss(logits_ref, label_ref, **kw)    # (1, tile)


def _make_logits_spec(C, tile):
    spec = pl.BlockSpec((1, C, tile), lambda n, t: (n, 0, t))
    if tile == 128:
        # Worst-case (large-C) 128-lane tiles: deepen the pipeline to hide DMA.
        try:
            spec = pl.BlockSpec((1, C, tile), lambda n, t: (n, 0, t),
                                pipeline_mode=pl.Buffered(3))
        except TypeError:
            pass
    return spec


def label_smooth_softmax_ce_v2(logits, label, *, lb_smooth=0.1, reduction="mean",
                               ignore_index=-100, max_block_bytes=None):
    """Forward of LabelSmoothSoftmaxCEV2. logits: (N, C, H, W); label: (N, H, W)."""
    N, C, H, W = logits.shape
    HW = H * W

    # Free views — no transpose, no pad: class axis stays where NCHW put it,
    # spatial axis is flattened onto the lane axis. Native dtype goes through
    # the DMA; the kernel upcasts per-tile to f32.
    x = logits.reshape(N, C, HW)
    lbl = label.reshape(N, 1, HW).astype(jnp.int32)

    itemsize = jnp.dtype(logits.dtype).itemsize
    vmem_phys = _physical_vmem_bytes()
    big_vmem = vmem_phys >= 100 * 1024 * 1024          # v5e/v6e (128 MiB) vs v7x (64 MiB)
    if max_block_bytes is None:
        max_block_bytes = (8 << 20) if big_vmem else (4 << 20)

    # Spatial tile: largest multiple of 128 whose per-lane footprint — sized
    # against the f32 temporaries (C*4 bytes/lane), not the input dtype — fits
    # the block budget, or the full spatial extent if smaller.
    bytes_per_lane = C * max(itemsize, 4)
    tile_cap = max(128, ((max_block_bytes // bytes_per_lane) // 128) * 128)
    # TODO(synk): for vocab-sized C (C*128*itemsize >> scoped VMEM) add a
    # class-tiled online-softmax variant (grid over C marked "arbitrary" with
    # running max/denominator/weighted-sum scratch) instead of loading the
    # full class column.
    tile = HW if HW <= tile_cap else tile_cap
    grid_t = pl.cdiv(HW, tile)

    # Feed both v7x TensorCores: guarantee a few grid steps when the batch is
    # tiny, as long as tiles stay >= 512 lanes (keeps per-step efficiency).
    MIN_STEPS = 4
    if N * grid_t < MIN_STEPS and HW >= 2 * 512:
        want_t = pl.cdiv(MIN_STEPS, N)
        cand = ((HW // want_t) // 128) * 128
        if cand >= 512:
            tile = cand
            grid_t = pl.cdiv(HW, tile)

    grid = (N, grid_t)
    tail_mask = (HW % tile) != 0

    in_specs = [
        _make_logits_spec(C, tile),
        pl.BlockSpec((1, 1, tile), lambda n, t: (n, 0, t)),
    ]

    # VMEM limit derived from double-buffered blocks + f32 temporaries + headroom,
    # clamped to a generation-appropriate ceiling.
    logits_block = C * tile * itemsize
    label_block = tile * 4
    est = 2 * (logits_block + label_block) + 4 * C * tile * 4 + (4 << 20)
    vmem_ceiling = (96 << 20) if big_vmem else (48 << 20)
    vmem_limit = int(min(max(est, 32 << 20), vmem_ceiling))

    cparams = pltpu.CompilerParams(
        dimension_semantics=("parallel", "parallel"),
        vmem_limit_bytes=vmem_limit)

    lb_pos = 1.0 - float(lb_smooth)
    lb_neg = float(lb_smooth) / C
    coeff = lb_pos + (C - 1) * lb_neg
    kw = dict(lb_pos=lb_pos, lb_neg=lb_neg, coeff=coeff,
              ignore_index=int(ignore_index), hw=HW, tile=tile,
              tail_mask=tail_mask)

    if reduction == "none":
        loss = pl.pallas_call(
            functools.partial(_lsr_none_kernel, **kw),
            out_shape=jax.ShapeDtypeStruct((N, 1, HW), jnp.float32),
            grid_spec=pltpu.PrefetchScalarGridSpec(
                num_scalar_prefetch=0, grid=grid, in_specs=in_specs,
                out_specs=pl.BlockSpec((1, 1, tile), lambda n, t: (n, 0, t))),
            compiler_params=cparams,
        )(x, lbl)
        return loss.reshape(N, H, W)

    # 'mean' / 'sum': per-tile loss partials only; the tiny final reduction
    # (and the integer valid count) happen in the JAX wrapper.
    G = N * grid_t
    loss_part = pl.pallas_call(
        functools.partial(_lsr_reduce_kernel, **kw),
        out_shape=jax.ShapeDtypeStruct((G, 1, 1), jnp.float32),
        grid_spec=pltpu.PrefetchScalarGridSpec(
            num_scalar_prefetch=0, grid=grid, in_specs=in_specs,
            out_specs=pl.BlockSpec((1, 1, 1), lambda n, t: (n * grid_t + t, 0, 0))),
        compiler_params=cparams,
    )(x, lbl)

    loss_sum = jnp.sum(loss_part)
    if reduction == "sum":
        return loss_sum
    # 'mean': divide by number of non-ignored positions (int32 count, computed
    # on the tiny label tensor by XLA). Like PyTorch, no guard against
    # n_valid == 0 (all-ignored -> inf/nan).
    n_valid = jnp.sum(label != ignore_index)
    return loss_sum / n_valid.astype(jnp.float32)


def _reference(logits, label, lb_smooth=0.1, reduction="mean", ignore_index=-100):
    """Pure-JAX reference mirroring the PyTorch forward."""
    N, C, H, W = logits.shape
    logp = jax.nn.log_softmax(logits.astype(jnp.float32), axis=1)      # (N,C,H,W)
    ignore = label == ignore_index
    lbl_c = jnp.where(ignore, 0, label)
    onehot = jax.nn.one_hot(lbl_c, C, axis=1, dtype=jnp.float32)       # (N,C,H,W)
    smooth = onehot * (1.0 - lb_smooth) + (1.0 - onehot) * (lb_smooth / C)
    smooth = jnp.where(ignore[:, None, :, :], 0.0, smooth)
    loss = -jnp.sum(logp * smooth, axis=1)                             # (N,H,W)
    if reduction == "mean":
        return jnp.sum(loss) / jnp.sum(~ignore)
    if reduction == "sum":
        return jnp.sum(loss)
    return loss


if __name__ == "__main__":
    key = jax.random.PRNGKey(0)
    k1, k2, k3 = jax.random.split(key, 3)

    N, C, H, W = 2, 4, 16, 16
    logits = jax.random.normal(k1, (N, C, H, W), dtype=jnp.float32)
    label = jax.random.randint(k2, (N, H, W), 0, C, dtype=jnp.int32)
    # sprinkle some ignored positions
    ignore_mask = jax.random.uniform(k3, (N, H, W)) < 0.1
    label = jnp.where(ignore_mask, -100, label)

    for reduction in ("mean", "sum", "none"):
        out = label_smooth_softmax_ce_v2(logits, label, lb_smooth=0.1,
                                         reduction=reduction, ignore_index=-100)
        out = jax.block_until_ready(out)
        ref = _reference(logits, label, lb_smooth=0.1, reduction=reduction,
                         ignore_index=-100)
        np.testing.assert_allclose(np.asarray(out), np.asarray(ref),
                                   rtol=1e-5, atol=1e-5)

    # bf16 path (exercises the native-dtype class-max).
    logits_bf16 = logits.astype(jnp.bfloat16)
    out = jax.block_until_ready(
        label_smooth_softmax_ce_v2(logits_bf16, label, lb_smooth=0.1,
                                   reduction="mean", ignore_index=-100))
    ref = _reference(logits_bf16, label, lb_smooth=0.1, reduction="mean",
                     ignore_index=-100)
    np.testing.assert_allclose(np.asarray(out), np.asarray(ref),
                               rtol=1e-4, atol=1e-4)

    print("KERNEL_OK")
</pallas_src>

<mosaic_0001>
module attributes {stable_mosaic.version = 11 : i64} {
  func.func @_lsr_reduce_kernel(%arg0: i32, %arg1: i32, %arg2: memref<1x4x256xf32, #tpu.memory_space<vmem>>, %arg3: memref<1x1x256xi32, #tpu.memory_space<vmem>>, %arg4: memref<1x1x1xf32, #tpu.memory_space<vmem>>) attributes {dimension_semantics = [#tpu.dimension_semantics<parallel>, #tpu.dimension_semantics<parallel>], iteration_bounds = array<i64: 2, 1>, scalar_prefetch = 0 : i64, scratch_operands = 0 : i64, tpu.core_type = #tpu.core_type<tc>, window_params = [{transform_indices = @transform_0, window_bounds = array<i64: 1, 4, 256>}, {transform_indices = @transform_1, window_bounds = array<i64: 1, 1, 256>}, {transform_indices = @transform_2, window_bounds = array<i64: 1, 1, 1>}]} {
    %c0 = arith.constant 0 : index
    %c0_0 = arith.constant 0 : index
    %c0_1 = arith.constant 0 : index
    %0 = vector.load %arg2[%c0, %c0_0, %c0_1] : memref<1x4x256xf32, #tpu.memory_space<vmem>>, vector<1x4x256xf32>
    %1 = vector.shape_cast %0 : vector<1x4x256xf32> to vector<4x256xf32>
    %c0_2 = arith.constant 0 : index
    %c0_3 = arith.constant 0 : index
    %c0_4 = arith.constant 0 : index
    %2 = vector.load %arg3[%c0_2, %c0_3, %c0_4] : memref<1x1x256xi32, #tpu.memory_space<vmem>>, vector<1x1x256xi32>
    %3 = vector.shape_cast %2 : vector<1x1x256xi32> to vector<1x256xi32>
    %cst = arith.constant dense<0xFF800000> : vector<256xf32>
    %4 = vector.multi_reduction <maximumf>, %1, %cst [0] : vector<4x256xf32> to vector<256xf32>
    %5 = vector.shape_cast %4 : vector<256xf32> to vector<1x256xf32>
    %6 = vector.broadcast %5 : vector<1x256xf32> to vector<4x256xf32>
    %7 = arith.subf %1, %6 : vector<4x256xf32>
    %8 = math.exp %7 : vector<4x256xf32>
    %cst_5 = arith.constant dense<0.000000e+00> : vector<256xf32>
    %9 = vector.multi_reduction <add>, %8, %cst_5 [0] : vector<4x256xf32> to vector<256xf32>
    %10 = vector.shape_cast %9 : vector<256xf32> to vector<1x256xf32>
    %11 = math.log %10 : vector<1x256xf32>
    %c-100_i32 = arith.constant -100 : i32
    %12 = vector.broadcast %c-100_i32 : i32 to vector<1x256xi32>
    %13 = arith.cmpi eq, %3, %12 : vector<1x256xi32>
    %c0_i32 = arith.constant 0 : i32
    %14 = vector.broadcast %c0_i32 : i32 to vector<1x256xi32>
    %15 = arith.select %13, %14, %3 : vector<1x256xi1>, vector<1x256xi32>
    %16 = tpu.iota {dimensions = array<i32: 0>} : vector<4x256xi32>
    %17 = vector.broadcast %15 : vector<1x256xi32> to vector<4x256xi32>
    %18 = arith.cmpi eq, %16, %17 : vector<4x256xi32>
    %cst_6 = arith.constant 0.899999976 : f32
    %cst_7 = arith.constant 2.500000e-02 : f32
    %19 = vector.broadcast %cst_6 : f32 to vector<4x256xf32>
    %20 = vector.broadcast %cst_7 : f32 to vector<4x256xf32>
    %21 = arith.select %18, %19, %20 : vector<4x256xi1>, vector<4x256xf32>
    %22 = arith.mulf %21, %7 : vector<4x256xf32>
    %cst_8 = arith.constant dense<0.000000e+00> : vector<256xf32>
    %23 = vector.multi_reduction <add>, %22, %cst_8 [0] : vector<4x256xf32> to vector<256xf32>
    %24 = vector.shape_cast %23 : vector<256xf32> to vector<1x256xf32>
    %cst_9 = arith.constant 9.750000e-01 : f32
    %25 = vector.broadcast %cst_9 : f32 to vector<1x256xf32>
    %26 = arith.mulf %25, %11 : vector<1x256xf32>
    %27 = arith.subf %26, %24 : vector<1x256xf32>
    %cst_10 = arith.constant dense<true> : vector<1x256xi1>
    %28 = arith.xori %13, %cst_10 : vector<1x256xi1>
    %cst_11 = arith.constant 0.000000e+00 : f32
    %29 = vector.broadcast %cst_11 : f32 to vector<1x256xf32>
    %30 = arith.select %28, %27, %29 : vector<1x256xi1>, vector<1x256xf32>
    %cst_12 = arith.constant dense<0.000000e+00> : vector<1xf32>
    %31 = vector.multi_reduction <add>, %30, %cst_12 [1] : vector<1x256xf32> to vector<1xf32>
    %32 = vector.shape_cast %31 : vector<1xf32> to vector<1x1xf32>
    %c0_13 = arith.constant 0 : index
    %c0_14 = arith.constant 0 : index
    %c0_15 = arith.constant 0 : index
    %33 = vector.load %arg4[%c0_13, %c0_14, %c0_15] : memref<1x1x1xf32, #tpu.memory_space<vmem>>, vector<1x1x1xf32>
    %34 = vector.shape_cast %33 : vector<1x1x1xf32> to vector<1x1xf32>
    %35 = vector.shape_cast %32 : vector<1x1xf32> to vector<1x1x1xf32>
    tpu.vector_store %arg4[%c0_13, %c0_14, %c0_15], %35 {strides = array<i32>} : memref<1x1x1xf32, #tpu.memory_space<vmem>>, vector<1x1x1xf32>,
    return
  }
  func.func @transform_0(%arg0: i32, %arg1: i32) -> (i32, i32, i32) {
    %c0_i32 = arith.constant 0 : i32
    %c0_i32_0 = arith.constant 0 : i32
    return %arg0, %c0_i32, %arg1 : i32, i32, i32
  }
  func.func @transform_1(%arg0: i32, %arg1: i32) -> (i32, i32, i32) {
    %c0_i32 = arith.constant 0 : i32
    %c0_i32_0 = arith.constant 0 : i32
    return %arg0, %c0_i32, %arg1 : i32, i32, i32
  }
  func.func @transform_2(%arg0: i32, %arg1: i32) -> (i32, i32, i32) {
    %c1_i32 = arith.constant 1 : i32
    %0 = arith.muli %arg0, %c1_i32 : i32
    %1 = arith.addi %0, %arg1 : i32
    %c0_i32 = arith.constant 0 : i32
    %c0_i32_0 = arith.constant 0 : i32
    %c0_i32_1 = arith.constant 0 : i32
    return %1, %c0_i32, %c0_i32_0 : i32, i32, i32
  }
}

</mosaic_0001>

<bundles_post_ra>
// kernel: tpu_custom_call.1
= control target key start
LH: loop header
LB: loop body
LE: loop exit
PB: predicated region body
PF: predicated region fallthrough
CT: control target
= control target key end

     0   :  { %7 = vsyncpa [#allocation3], 0  ;;  %s866_s0 = inlined_call_operand.hbm [shape: f32[2,4,256], index: 0, kind: input, shape index: {}]   ;;  %s867_s1 = inlined_call_operand.hbm [shape: s32[2,1,256], index: 1, kind: input, shape index: {}]   ;;  %s868_s2 = inlined_call_operand.vmem [shape: f32[2,1,1], index: 2, kind: output, shape index: {}]  }
   0x1   :  { %9 = vsyncpa [#allocation3 + $0x1], 0 }
   0x2   :  { %10 = vsyncpa [#allocation5], 0 }
   0x3   :  { %12 = vsyncpa [#allocation5 + $0x1], 0  ;;  %s671_s9 = smov 0   ;;  %s673_s10 = smov 0  }
   0x4   :  { %s675_s11 = smov 0   ;;  %s677_s12 = smov 0  }
   0x5   :  { %s679_s13 = smov 0   ;;  %s681_s14 = smov 0  }
   0x6 LB: > { %s448_s15 = sadd.s32 4294967295, %s649_s14   ;;  %s30_s16 = sadd.s32 1, %s645_s13  ;;  %s649_s14 = sphi %s681_s14, %s18_s14   ;;  %s645_s13 = sphi %s679_s13, %s882_s13   ;;  %s641_s12 = sphi %s677_s12, %s881_s12   ;;  %s637_s11 = sphi %s675_s11, %s880_s11   ;;  %s633_s10 = sphi %s673_s10, %s879_s10   ;;  %s629_s9 = sphi %s671_s9, %s878_s9  }
   0x7   : > { %p32_p0 = scmp.ge.s32.totalorder %s30_s16, 2  ;;  %s39_s17 = sadd.s32 1, %s637_s11 }
   0x8   : > { %p46_p1 = scmp.ne.s32.totalorder %s637_s11, %s633_s10  ;;  %p47_p2 = scmp.eq.s32.totalorder %s649_s14, 0 }
   0x9   : > { %s884_s16 = smov (%p32_p0, %s30_s16), 0  ;;  %p52_p4 = scmp.ne.s32.totalorder %s633_s10, %s629_s9 }
   0xa   : > { %p707_p3 = por %p47_p2, %p46_p1  ;;  %s34_s19 = ssub.s32 %s645_s13, %s884_s16 }
   0xb   : > { %p53_p5 = scmp.eq.s32.totalorder %s448_s15, 0  ;;  %p37_p6 = scmp.eq.s32.totalorder %s34_s19, 0 }
   0xc   : > { %p476_p8 = scmp.lt.s32.totalorder %s649_s14, 2  ;;  %s723_s22 = sand.u32 1, %s637_s11  }
   0xd   : > { %p714_p7 = por %p53_p5, %p52_p4  ;;  %s463_s23 = sshll.u32 %s645_s13, 7 }
   0xe   : > { %s720_s21 = scalar_select %p37_p6, %s637_s11, %s39_s17  }
   0xf   : > { %s871_s20 = scalar_select %p714_p7, 1, 0 }
  0x10   : > { %s452_s24 = sshll.u32 %s723_s22, 3  ;;  %s730_s27 = scalar_lea.hbm %s866_s0, %s463_s23 }
  0x11   : > { %s136_s28 = scalar_lea.vmem [#allocation2], %s452_s24  ;;  %p734_p9 = pnand %p476_p8, %p707_p3 }
  0x12   : > { %s146_s29 = sshll.u32 %s136_s28, 4  ;;  %s133_s3 = scalar_lea.sflag [#allocation3], %s723_s22  ;;  %s738_s29 = int_to_ptr.vmem [resolvable:$true] %s146_s29 }
  0x13   : > { %s535_s4 = scalar_lea.hbm %s730_s27, 128  ;;  %p537_p13 = pneg %p734_p9 }
  0x14   : > { %p536_p12 = scmp.ne.s32.totalorder %s730_s27, %s535_s4  ;;  %s540_s7 = scalar_lea.hbm %s866_s0, 256 }
  0x15   : > { %p541_p2 = scmp.lt.u32.totalorder %s730_s27, %s866_s0  ;;  %p542_p3 = scmp.lt.u32.totalorder %s540_s7, %s535_s4 }
  0x16   : > { %p538_p0 = pnand %p537_p13, %p536_p12  ;;  %p544_p5 = scmp.lt.u32.totalorder %s535_s4, %s730_s27 }
  0x17   : > { %p543_p4 = por %p542_p3, %p541_p2 }
  0x18   : > { %p539_p1 = pneg %p538_p0 }
  0x19   : > { %p545_p6 = por %p544_p5, %p543_p4 }
  0x1b   : > { %p546_p8 = pnand %p545_p6, %p539_p1 }
  0x1d   : > { %549 = shalt.err (!%p546_p8)
}
  0x1e   : > { %s550_s15 = scalar_lea.vmem %s738_s29, 128  ;;  %s651_s17 = smov [#allocation2]  }
  0x1f   : > { %p551_p12 = scmp.ne.s32.totalorder %s738_s29, %s550_s15  ;;  %s555_s18 = sshll.u32 %s651_s17, 4  ;;  %s556_s18 = int_to_ptr.vmem [resolvable:$false] %s555_s18 }
  0x20   : > { %s557_s19 = scalar_lea.vmem %s556_s18, 256  ;;  %p558_p11 = scmp.lt.s32.totalorder %s738_s29, %s556_s18 }
  0x21   : > { %p553_p0 = pnand %p551_p12, %p537_p13  ;;  %p559_p2 = scmp.lt.s32.totalorder %s557_s19, %s550_s15 }
  0x23   : > { %p554_p10 = pneg %p553_p0  ;;  %p560_p3 = por %p559_p2, %p558_p11 }
  0x25   : > { %p561_p4 = pnand %p560_p3, %p554_p10 }
  0x27   : > { %564 = shalt.err (!%p561_p4)
}
  0x28   : > { %472 = dma.hbm_to_vmem [thread:$0]  (!%p734_p9), %s730_s27, 128, %s738_s29, %s133_s3  }
  0x29   : > { %p873_p1 = scmp.lt.s32.totalorder %s649_s14, 3  ;;  %p874_p5 = scmp.ge.s32.totalorder %s649_s14, 1 }
  0x2a   : > { %s455_s24 = sshll.u32 %s723_s22, 1  ;;  %s464_s25 = sshll.u32 %s645_s13, 5 }
  0x2b   : > { %p772_p6 = pnand %p874_p5, %p873_p1  ;;  %s781_s4 = scalar_lea.hbm %s867_s1, %s464_s25 }
  0x2c   : > { %s157_s5 = scalar_lea.vmem [#allocation4], %s455_s24  ;;  %s154_s27 = scalar_lea.sflag [#allocation5], %s723_s22 }
  0x2d   : > { %s875_s23 = scalar_select %p772_p6, 1, 0 }
  0x2e   : > { %s167_s6 = sshll.u32 %s157_s5, 4  ;;  %s565_s29 = scalar_lea.hbm %s781_s4, 32  ;;  %s168_s6 = int_to_ptr.vmem [resolvable:$true] %s167_s6 }
  0x2f   : > { %p566_p10 = scmp.ne.s32.totalorder %s781_s4, %s565_s29  ;;  %s570_s8 = scalar_lea.hbm %s867_s1, 64 }
  0x30   : > { %p571_p12 = scmp.lt.u32.totalorder %s781_s4, %s867_s1  ;;  %p572_p0 = scmp.lt.u32.totalorder %s570_s8, %s565_s29 }
  0x31   : > { %p568_p11 = pnand %p566_p10, %p537_p13  ;;  %p574_p3 = scmp.lt.u32.totalorder %s565_s29, %s781_s4 }
  0x32   : > { %p573_p2 = por %p572_p0, %p571_p12 }
  0x33   : > { %p569_p8 = pneg %p568_p11 }
  0x34   : > { %p575_p4 = por %p574_p3, %p573_p2 }
  0x36   : > { %p576_p1 = pnand %p575_p4, %p569_p8 }
  0x38   : > { %579 = shalt.err (!%p576_p1)
}
  0x39   : > { %s580_s22 = scalar_lea.vmem %s168_s6, 32  ;;  %s652_s17 = smov [#allocation4]  }
  0x3a   : > { %p581_p5 = scmp.ne.s32.totalorder %s168_s6, %s580_s22  ;;  %s585_s18 = sshll.u32 %s652_s17, 4  ;;  %s586_s18 = int_to_ptr.vmem [resolvable:$false] %s585_s18 }
  0x3b   : > { %s587_s19 = scalar_lea.vmem %s586_s18, 64  ;;  %p588_p7 = scmp.lt.s32.totalorder %s168_s6, %s586_s18 }
  0x3c   : > { %p583_p10 = pnand %p581_p5, %p537_p13  ;;  %p589_p6 = scmp.lt.s32.totalorder %s587_s19, %s580_s22 }
  0x3e   : > { %p584_p11 = pneg %p583_p10  ;;  %p590_p0 = por %p589_p6, %p588_p7 }
  0x40   : > { %p591_p12 = pnand %p590_p0, %p584_p11 }
  0x42   : > { %594 = shalt.err (!%p591_p12)
}
  0x43   : > { %475 = dma.hbm_to_vmem [thread:$0]  (!%p734_p9), %s781_s4, 32, %s168_s6, %s154_s27  }
  0x44   : > { %p876_p8 = scmp.ne.s32.totalorder %s875_s23, 0 }
  0x45   : > { %s178_s24 = sand.u32 (!%p876_p8), 1, %s633_s10   ;;  %p877_p13 = scmp.ne.s32.totalorder (!%p876_p8), %s871_s20, 0 }
  0x46   : > { %176 = sbr.rel (%p876_p8) target bundleno = 301 (0x12d), region = 28  ;;  %s459_s25 = sshll.u32 (!%p876_p8), %s178_s24, 3 }
  0x47   : > { %s179_s26 = scalar_lea.sflag (!%p876_p8), [#allocation3], %s178_s24  ;;  %s182_s28 = scalar_lea.vmem (!%p876_p8), [#allocation2], %s459_s25 }
  0x4d   : > { %620 = dma.done.wait (%p877_p13), %s179_s26, 128  }
  0x4e   : > { %622 = vsyncadd (%p877_p13), %s179_s26, 4294967168  ;;  %s460_s5 = sshll.u32 %s178_s24, 1  ;;  %s188_s29 = scalar_lea.sflag [#allocation5], %s178_s24 }
  0x4f   : > { %s191_s30 = scalar_lea.vmem [#allocation4], %s460_s5 }
  0x50   : > { %624 = dma.done.wait (%p877_p13), %s188_s29, 32  }
  0x51   : > { %626 = vsyncadd (%p877_p13), %s188_s29, 4294967264  ;;  %vm228_vm0 = vcmask 1043456   ;;  %v223_v0 = vld [vmem:[%s182_s28] sm:$0xff]  ;;  %v273_v11 = vlaneseq  ;;  %v816_v14 = vld [vmem:[%s191_s30] sm:$0x3]  ;;  %vm655_vm4 = vmmov 1  }
  0x52   : > { %v226_v1 = vcombine.high %v223_v0, %v223_v0  ;;  %v229_v2 = vsel %vm228_vm0, %v223_v0, -inf  ;;  %vm271_vm1 = vcmp.eq.s32.totalorder %v816_v14, 4294967196  ;;  %v653_v27 = vmov 0.025   ;;  %p219_p7 = scmp.lt.s32.totalorder %s641_s12, 1 }
  0x53   : > { %v230_v3 = vrot.slane %v229_v2, 4  ;;  %v818_v17 = vshrl.u32 %v273_v11, 7  ;;  %v272_v21 = vsel %vm271_vm1, 0, %v816_v14  ;;  %v654_v61 = vmov 1966171168   ;;  %vm310_vm5 = vmxor %vm271_vm1, %vm655_vm4 }
  0x54   : > { %v236_v4 = vsel %vm228_vm0, %v226_v1, -inf  ;;  %v315_v62 = vunpack.c.l.s4 %v654_v61  ;;  %vm341_vm6 = vcmask 1040384   ;;  %s886_s12 = smov (!%p219_p7, %s641_s12), 1  ;;  %vm347_vm7 = vcmask 0  }
  0x55   : > { %v231_v5 = vmax.f32 %v229_v2, %v230_v3  ;;  %v237_v6 = vrot.slane %v236_v4, 4  ;;  %v277_v20 = vsub.s32 0, %v818_v17  ;;  %v281_v23 = vsub.s32 1, %v818_v17  ;;  %s221_s4 = scalar_lea.vmem %s868_s2, %s886_s12 }
  0x57   : > { %v232_v7 = vrot.slane %v231_v5, 2  ;;  %v238_v8 = vmax.f32 %v236_v4, %v237_v6  ;;  %v278_v25 = vrot.slane %v272_v21, %v277_v20  ;;  %v282_v26 = vrot.slane %v272_v21, %v281_v23 }
  0x58   : > { %v316_v6 = vunpack.c.0.s8 %v315_v62 }
  0x59   : > { %v233_v9 = vmax.f32 %v231_v5, %v232_v7  ;;  %v239_v10 = vrot.slane %v238_v8, 2  ;;  %vm283_vm2 = vcmp.eq.s32.totalorder %v818_v17, %v278_v25  ;;  %vm284_vm3 = vcmp.eq.s32.totalorder %v818_v17, %v282_v26 }
  0x5a   : > { %v285_v28 = vsel %vm283_vm2, 0.9, %v653_v27  ;;  %v286_v30 = vsel %vm284_vm3, 0.9, %v653_v27 }
  0x5b   : > { %v234_v12 = vrot.slane %v233_v9, 1  ;;  %v240_v13 = vmax.f32 %v238_v8, %v239_v10  ;;  %v319_v10 = vsub.s32 %v316_v6, %v818_v17 }
  0x5d   : > { %v235_v15 = vmax.f32 %v233_v9, %v234_v12  ;;  %v241_v16 = vrot.slane %v240_v13, 1 }
  0x5f   : > { %v242_v18 = vmax.f32 %v240_v13, %v241_v16 }
  0x61   : > { %v245_v19 = vcombine.low %v235_v15, %v242_v18 }
  0x63   : > { %v247_v22 = vsub.f32 %v223_v0, %v245_v19 }
  0x65   : > { %v248_v24 = vmul.f32 1.442695, %v247_v22  ;;  %v288_v29 = vcombine.high %v247_v22, %v247_v22  ;;  %v290_v31 = vmul.f32 %v285_v28, %v247_v22 }
  0x67   : > { %529 = vpow2.f32 %v248_v24  ;;  %v291_v33 = vmul.f32 %v288_v29, %v286_v30  ;;  %v292_v37 = vsel %vm228_vm0, %v290_v31, 0.0 }
  0x68   : > { %v293_v42 = vrot.slane %v292_v37, 4 }
  0x69   : > { %v299_v41 = vsel %vm228_vm0, %v291_v33, 0.0 }
  0x6a   : > { %v300_v45 = vrot.slane %v299_v41, 4  ;;  %v294_v48 = vadd.f32 %v293_v42, %v292_v37 }
  0x6c   : > { %v301_v51 = vadd.f32 %v300_v45, %v299_v41  ;;  %v295_v54 = vrot.slane %v294_v48, 2 }
  0x6e   : > { %v302_v56 = vrot.slane %v301_v51, 2  ;;  %v296_v57 = vadd.f32 %v295_v54, %v294_v48 }
  0x70   : > { %v303_v58 = vadd.f32 %v302_v56, %v301_v51  ;;  %v297_v59 = vrot.slane %v296_v57, 1 }
  0x71   : > { %v530_v32 = vpop.eup %529 }
  0x72   : > { %v251_v34 = vcombine.high %v530_v32, %v530_v32  ;;  %v253_v35 = vsel %vm228_vm0, %v530_v32, 0.0  ;;  %v304_v60 = vrot.slane %v303_v58, 1  ;;  %v298_v1 = vadd.f32 %v297_v59, %v296_v57 }
  0x73   : > { %v254_v36 = vrot.slane %v253_v35, 4 }
  0x74   : > { %v260_v38 = vsel %vm228_vm0, %v251_v34, 0.0  ;;  %v305_v4 = vadd.f32 %v304_v60, %v303_v58 }
  0x75   : > { %v255_v39 = vadd.f32 %v254_v36, %v253_v35  ;;  %v261_v40 = vrot.slane %v260_v38, 4 }
  0x77   : > { %v256_v43 = vrot.slane %v255_v39, 2  ;;  %v262_v44 = vadd.f32 %v261_v40, %v260_v38 }
  0x79   : > { %v257_v46 = vadd.f32 %v256_v43, %v255_v39  ;;  %v263_v47 = vrot.slane %v262_v44, 2 }
  0x7b   : > { %v258_v49 = vrot.slane %v257_v46, 1  ;;  %v264_v50 = vadd.f32 %v263_v47, %v262_v44 }
  0x7d   : > { %v259_v52 = vadd.f32 %v258_v49, %v257_v46  ;;  %v265_v53 = vrot.slane %v264_v50, 1 }
  0x7f   : > { %v266_v55 = vadd.f32 %v265_v53, %v264_v50  ;;  %531 = vlog2.f32 %v259_v52 }
  0x81   : > { %533 = vlog2.f32 %v266_v55 }
  0x89   : > { %v532_v63 = vpop.eup %531 }
  0x8a   : > { %v268_v0 = vmul.f32 0.6931472, %v532_v63 }
  0x8b   : > { %v534_v2 = vpop.eup %533 }
  0x8c   : > { %v270_v3 = vmul.f32 0.6931472, %v534_v2  ;;  %v306_v5 = vmul.f32 0.975, %v268_v0 }
  0x8e   : > { %v307_v7 = vmul.f32 0.975, %v270_v3  ;;  %v308_v8 = vsub.f32 %v306_v5, %v298_v1 }
  0x90   : > { %v309_v9 = vsub.f32 %v307_v7, %v305_v4 }
  0x92   : > { %v313_v11 = vcombine.low %v308_v8, %v309_v9 }
  0x94   : > { %v320_v12 = vrot.slane %v313_v11, %v319_v10 }
  0x96   : > { %v327_v13 = vrot.slane %v320_v12, %v319_v10 }
  0x98   : > { %v329_v15 = vsel %vm310_vm5, %v327_v13, 0.0 }
  0x99   : > { %v334_v16 = vrot.slane %v329_v15, %v277_v20  ;;  %v338_v18 = vrot.slane %v329_v15, %v281_v23 }
  0x9b   : > { %v342_v19 = vsel %vm341_vm6, %v334_v16, 0.0  ;;  %v343_v21 = vsel %vm341_vm6, %v338_v18, 0.0 }
  0x9c   : > { %v344_v22 = vadd.f32 %v343_v21, %v342_v19 }
  0x9e   : > { %345 = vadd.xlane.f32.xlu0 %v344_v22 }
 0x12b   : > { %v346_v14 = vpop.xlane.xlu0 %345 }
 0x12c   : > { %348 = vst.msk [vmem:[%s221_s4] sm:$0x1] %vm347_vm7, %v346_v14 }
 0x12d PF: > { %s18_s14 = sadd.s32 1, %s649_s14   ;;  %s878_s9 = smov %s633_s10 }
 0x12e   : > { %p15_p9 = scmp.ge.s32.totalorder %s18_s14, 4   ;;  %s879_s10 = smov %s637_s11 }
 0x12f   : > { %s880_s11 = smov %s720_s21  ;;  %s881_s12 = smov %s645_s13 }
 0x130   : > { %s882_s13 = smov %s884_s16  ;;  %17 = sbr.rel (!%p15_p9) target bundleno = 6 (0x6), region = 81 }
 0x137   :  { %369 = vsyncpa [#allocation3], 1 }
 0x138   :  { %371 = vsyncpa [#allocation3 + $0x1], 1 }
 0x139   :  { %372 = vsyncpa [#allocation5], 1 }
 0x13a   :  { %374 = vsyncpa [#allocation5 + $0x1], 1 }

</bundles_post_ra>
